<compile_context>
chip_gen: v7x
topology: tpu7x:2x2x1
jax: 0.10.0
libtpu: 0.0.40
codegen_flags: <defaults>
</compile_context>

<pallas_src>
import functools
import math

import jax
import jax.numpy as jnp
from jax.experimental import pallas as pl
from jax.experimental.pallas import tpu as pltpu


_STRIP = 8  # sublane rows per in-kernel strip; per-strip carry is a few vregs


def _lif_kernel(x_ref, spike_ref, mem_ref, *, T, vthr, tau):
    """x_ref / spike_ref / mem_ref: (T, TILE_R, L) VMEM blocks.

    The row axis of the block is strip-mined in 8-sublane chunks with the small
    static T recurrence unrolled innermost, so the loop-carried vmem plane
    stays in vector registers (instead of +1 vld/+1 vst per element per
    timestep through VMEM) and the per-block DMAs stay large.
    """
    tile_r = x_ref.shape[1]
    L = x_ref.shape[2]
    n_strips = tile_r // _STRIP  # tile_r is always a multiple of 8

    def strip_body(s, carry):
        row = pl.multiple_of(s * _STRIP, _STRIP)
        vmem = jnp.zeros((_STRIP, L), dtype=jnp.float32)
        for t in range(T):  # T is small & static -> unroll; carry lives in vregs
            vmem = vmem + x_ref[t, pl.ds(row, _STRIP), :].astype(jnp.float32)
            # Exact (vmem - vthr) > 0 compare for parity with the PyTorch ZIF fwd.
            pred = (vmem - vthr) > 0.0
            spike_ref[t, pl.ds(row, _STRIP), :] = pred.astype(spike_ref.dtype)
            vmem = jnp.where(pred, 0.0, vmem)          # hard reset
            mem_ref[t, pl.ds(row, _STRIP), :] = vmem.astype(mem_ref.dtype)
            vmem = vmem * tau                          # membrane decay
        return carry

    jax.lax.fori_loop(0, n_strips, strip_body, 0)


def _cdiv(a, b):
    return -(-a // b)


def _tpu_budgets():
    """(target input-block bytes per grid step, vmem_limit_bytes) per TPU gen."""
    kind = ""
    try:
        kind = jax.devices()[0].device_kind.lower()
    except Exception:
        pass
    if "v7" in kind or "7x" in kind:
        # v7x: only 64 MiB physical VMEM -> hard cap well below it.
        return 2 << 20, 40 << 20
    if "v6" in kind:
        # v6e: 128 MiB physical -> bigger blocks and a raised limit are free.
        return 6 << 20, 80 << 20
    if "v5" in kind:
        # v5e: 16 MiB scoped default is tight -> smaller blocks, raised limit.
        return (3 << 20) // 2, 48 << 20
    # Unknown generation: conservative values that are safe on all three.
    return 2 << 20, 48 << 20


def _choose_layout(N, T, dtype_bytes, target_block_bytes, min_steps=8):
    """Pick lane width L, row count R, tail padding, and rows-per-block tile_r."""
    lane_opts = (512, 256, 128)
    L = None
    # Prefer a lane width that divides N exactly AND leaves >= 8 rows so every
    # vreg has full sublane occupancy.
    for cand in lane_opts:
        if N % cand == 0 and (N // cand) >= 8:
            L = cand
            break
    if L is None:
        # Small-N fallback: prefer the SMALLEST lane width that divides N to
        # maximize row count / sublane occupancy.
        for cand in (128, 256, 512):
            if N % cand == 0:
                L = cand
                break
    pad = 0
    if L is None:
        # TODO(synk): handle the ragged tail inside the kernel (masked last
        # block) instead of a jnp.pad / slice round trip over HBM.
        L = 128
        pad = (-N) % L
    R = (N + pad) // L

    # Rows per grid step: multiple of 8, sized to ~target_block_bytes of input,
    # but never so large that the grid collapses below min_steps steps. The
    # multi-step grid is what enables software pipelining (prefetch i+1 /
    # writeback i-1 under compute) and even 2-TensorCore sharding on v7x.
    rows_budget = max(8, (target_block_bytes // (T * L * dtype_bytes)) // 8 * 8)
    rows_for_min_steps = max(8, (R // min_steps) // 8 * 8)
    tile_r = max(8, min(rows_budget, rows_for_min_steps))

    # Best-effort: make the step count even so v7x's 2 TensorCores split evenly.
    steps = _cdiv(R, tile_r)
    if steps > 1 and steps % 2 == 1:
        for cand in range(tile_r - 8, max(7, tile_r - 8 * 8), -8):
            if _cdiv(R, cand) % 2 == 0:
                tile_r = cand
                break
    return L, R, pad, tile_r


def lif_forward(x, *, vthr=1.0, tau=0.5, spike_dtype=None):
    """LIF multistep forward, hard reset. x: (T, ...) float. Returns (spikes, mems).

    spike_dtype: optional narrower dtype (e.g. jnp.bfloat16) for the spike
    output to cut HBM writeback traffic on this bandwidth-bound kernel;
    defaults to x.dtype for exact parity with the PyTorch module.
    """
    T = x.shape[0]
    rest_shape = x.shape[1:]
    N = math.prod(rest_shape)
    spike_dtype = x.dtype if spike_dtype is None else jnp.dtype(spike_dtype)

    target_block_bytes, vmem_limit = _tpu_budgets()
    L, R, pad, tile_r = _choose_layout(N, T, x.dtype.itemsize, target_block_bytes)

    x2 = x.reshape(T, N)
    if pad:  # only when N is not a multiple of 128 (rare for conv feature maps)
        x2 = jnp.pad(x2, ((0, 0), (0, pad)))
    x3 = x2.reshape(T, R, L)

    kernel = functools.partial(_lif_kernel, T=T, vthr=float(vthr), tau=float(tau))
    block = (T, tile_r, L)
    grid = (_cdiv(R, tile_r),)

    cost = pl.CostEstimate(
        flops=5 * T * N,
        transcendentals=0,
        bytes_accessed=T * N * (2 * x.dtype.itemsize + spike_dtype.itemsize),
    )

    spikes3, mems3 = pl.pallas_call(
        kernel,
        out_shape=(
            jax.ShapeDtypeStruct((T, R, L), spike_dtype),
            jax.ShapeDtypeStruct((T, R, L), x.dtype),
        ),
        grid_spec=pltpu.PrefetchScalarGridSpec(
            num_scalar_prefetch=0,
            grid=grid,
            in_specs=[pl.BlockSpec(block, lambda i: (0, i, 0))],
            out_specs=[
                pl.BlockSpec(block, lambda i: (0, i, 0)),
                pl.BlockSpec(block, lambda i: (0, i, 0)),
            ],
        ),
        compiler_params=pltpu.CompilerParams(
            dimension_semantics=("parallel",),
            vmem_limit_bytes=vmem_limit,
        ),
        cost_estimate=cost,
    )(x3)

    spikes2 = spikes3.reshape(T, R * L)
    mems2 = mems3.reshape(T, R * L)
    if pad:
        spikes2 = spikes2[:, :N]
        mems2 = mems2[:, :N]
    spikes = spikes2.reshape((T,) + rest_shape)
    mems = mems2.reshape((T,) + rest_shape)
    return spikes, mems


def _lif_reference(x, vthr=1.0, tau=0.5):
    """Pure-JAX reference mirroring the PyTorch multistep loop."""
    T = x.shape[0]
    vmem = jnp.zeros_like(x[0])
    spikes, mems = [], []
    for t in range(T):
        vmem = vmem + x[t]
        spike = ((vmem - vthr) > 0.0).astype(x.dtype)
        vmem = vmem * (1.0 - spike)
        spikes.append(spike)
        mems.append(vmem)
        vmem = vmem * tau
    return jnp.stack(spikes, 0), jnp.stack(mems, 0)


if __name__ == "__main__":
    T, B, C, H, W = 4, 2, 4, 16, 16
    key = jax.random.PRNGKey(0)
    x = jax.random.normal(key, (T, B, C, H, W), dtype=jnp.float32) * 1.5

    spikes, mems = lif_forward(x, vthr=1.0, tau=0.5)
    jax.block_until_ready((spikes, mems))

    ref_spikes, ref_mems = _lif_reference(x, vthr=1.0, tau=0.5)
    assert spikes.shape == x.shape and mems.shape == x.shape
    assert jnp.allclose(spikes, ref_spikes, atol=1e-6)
    assert jnp.allclose(mems, ref_mems, atol=1e-5)

    print("KERNEL_OK")
</pallas_src>

<mosaic_0001>
module attributes {stable_mosaic.version = 11 : i64} {
  func.func @_lif_kernel(%arg0: i32, %arg1: memref<4x8x256xf32, #tpu.memory_space<vmem>>, %arg2: memref<4x8x256xf32, #tpu.memory_space<vmem>>, %arg3: memref<4x8x256xf32, #tpu.memory_space<vmem>>) attributes {dimension_semantics = [#tpu.dimension_semantics<parallel>], iteration_bounds = array<i64: 1>, scalar_prefetch = 0 : i64, scratch_operands = 0 : i64, tpu.core_type = #tpu.core_type<tc>, window_params = [{transform_indices = @transform_0, window_bounds = array<i64: 4, 8, 256>}, {transform_indices = @transform_1, window_bounds = array<i64: 4, 8, 256>}, {transform_indices = @transform_2, window_bounds = array<i64: 4, 8, 256>}]} {
    %c0_i32 = arith.constant 0 : i32
    %c8_i32 = arith.constant 8 : i32
    %0 = arith.muli %c0_i32, %c8_i32 : i32
    %1 = tpu.assume_multiple %0, 8 : i32
    %cst = arith.constant 0.000000e+00 : f32
    %2 = vector.broadcast %cst : f32 to vector<8x256xf32>
    %c0 = arith.constant 0 : index
    %3 = arith.index_cast %1 : i32 to index
    %c0_0 = arith.constant 0 : index
    %4 = vector.load %arg1[%c0, %3, %c0_0] : memref<4x8x256xf32, #tpu.memory_space<vmem>>, vector<1x8x256xf32>
    %5 = vector.shape_cast %4 : vector<1x8x256xf32> to vector<8x256xf32>
    %6 = arith.addf %2, %5 : vector<8x256xf32>
    %cst_1 = arith.constant 1.000000e+00 : f32
    %7 = vector.broadcast %cst_1 : f32 to vector<8x256xf32>
    %8 = arith.subf %6, %7 : vector<8x256xf32>
    %cst_2 = arith.constant 0.000000e+00 : f32
    %9 = vector.broadcast %cst_2 : f32 to vector<8x256xf32>
    %10 = arith.cmpf ogt, %8, %9 : vector<8x256xf32>
    %11 = arith.extui %10 : vector<8x256xi1> to vector<8x256xi32>
    %12 = arith.sitofp %11 : vector<8x256xi32> to vector<8x256xf32>
    %c0_3 = arith.constant 0 : index
    %13 = arith.index_cast %1 : i32 to index
    %c0_4 = arith.constant 0 : index
    %14 = vector.load %arg2[%c0_3, %13, %c0_4] : memref<4x8x256xf32, #tpu.memory_space<vmem>>, vector<1x8x256xf32>
    %15 = vector.shape_cast %14 : vector<1x8x256xf32> to vector<8x256xf32>
    %16 = vector.shape_cast %12 : vector<8x256xf32> to vector<1x8x256xf32>
    tpu.vector_store %arg2[%c0_3, %13, %c0_4], %16 {strides = array<i32>} : memref<4x8x256xf32, #tpu.memory_space<vmem>>, vector<1x8x256xf32>,
    %cst_5 = arith.constant 0.000000e+00 : f32
    %17 = vector.broadcast %cst_5 : f32 to vector<8x256xf32>
    %18 = arith.select %10, %17, %6 : vector<8x256xi1>, vector<8x256xf32>
    %c0_6 = arith.constant 0 : index
    %19 = arith.index_cast %1 : i32 to index
    %c0_7 = arith.constant 0 : index
    %20 = vector.load %arg3[%c0_6, %19, %c0_7] : memref<4x8x256xf32, #tpu.memory_space<vmem>>, vector<1x8x256xf32>
    %21 = vector.shape_cast %20 : vector<1x8x256xf32> to vector<8x256xf32>
    %22 = vector.shape_cast %18 : vector<8x256xf32> to vector<1x8x256xf32>
    tpu.vector_store %arg3[%c0_6, %19, %c0_7], %22 {strides = array<i32>} : memref<4x8x256xf32, #tpu.memory_space<vmem>>, vector<1x8x256xf32>,
    %cst_8 = arith.constant 5.000000e-01 : f32
    %23 = vector.broadcast %cst_8 : f32 to vector<8x256xf32>
    %24 = arith.mulf %18, %23 : vector<8x256xf32>
    %c1 = arith.constant 1 : index
    %25 = arith.index_cast %1 : i32 to index
    %c0_9 = arith.constant 0 : index
    %26 = vector.load %arg1[%c1, %25, %c0_9] : memref<4x8x256xf32, #tpu.memory_space<vmem>>, vector<1x8x256xf32>
    %27 = vector.shape_cast %26 : vector<1x8x256xf32> to vector<8x256xf32>
    %28 = arith.addf %24, %27 : vector<8x256xf32>
    %cst_10 = arith.constant 1.000000e+00 : f32
    %29 = vector.broadcast %cst_10 : f32 to vector<8x256xf32>
    %30 = arith.subf %28, %29 : vector<8x256xf32>
    %cst_11 = arith.constant 0.000000e+00 : f32
    %31 = vector.broadcast %cst_11 : f32 to vector<8x256xf32>
    %32 = arith.cmpf ogt, %30, %31 : vector<8x256xf32>
    %33 = arith.extui %32 : vector<8x256xi1> to vector<8x256xi32>
    %34 = arith.sitofp %33 : vector<8x256xi32> to vector<8x256xf32>
    %c1_12 = arith.constant 1 : index
    %35 = arith.index_cast %1 : i32 to index
    %c0_13 = arith.constant 0 : index
    %36 = vector.load %arg2[%c1_12, %35, %c0_13] : memref<4x8x256xf32, #tpu.memory_space<vmem>>, vector<1x8x256xf32>
    %37 = vector.shape_cast %36 : vector<1x8x256xf32> to vector<8x256xf32>
    %38 = vector.shape_cast %34 : vector<8x256xf32> to vector<1x8x256xf32>
    tpu.vector_store %arg2[%c1_12, %35, %c0_13], %38 {strides = array<i32>} : memref<4x8x256xf32, #tpu.memory_space<vmem>>, vector<1x8x256xf32>,
    %cst_14 = arith.constant 0.000000e+00 : f32
    %39 = vector.broadcast %cst_14 : f32 to vector<8x256xf32>
    %40 = arith.select %32, %39, %28 : vector<8x256xi1>, vector<8x256xf32>
    %c1_15 = arith.constant 1 : index
    %41 = arith.index_cast %1 : i32 to index
    %c0_16 = arith.constant 0 : index
    %42 = vector.load %arg3[%c1_15, %41, %c0_16] : memref<4x8x256xf32, #tpu.memory_space<vmem>>, vector<1x8x256xf32>
    %43 = vector.shape_cast %42 : vector<1x8x256xf32> to vector<8x256xf32>
    %44 = vector.shape_cast %40 : vector<8x256xf32> to vector<1x8x256xf32>
    tpu.vector_store %arg3[%c1_15, %41, %c0_16], %44 {strides = array<i32>} : memref<4x8x256xf32, #tpu.memory_space<vmem>>, vector<1x8x256xf32>,
    %cst_17 = arith.constant 5.000000e-01 : f32
    %45 = vector.broadcast %cst_17 : f32 to vector<8x256xf32>
    %46 = arith.mulf %40, %45 : vector<8x256xf32>
    %c2 = arith.constant 2 : index
    %47 = arith.index_cast %1 : i32 to index
    %c0_18 = arith.constant 0 : index
    %48 = vector.load %arg1[%c2, %47, %c0_18] : memref<4x8x256xf32, #tpu.memory_space<vmem>>, vector<1x8x256xf32>
    %49 = vector.shape_cast %48 : vector<1x8x256xf32> to vector<8x256xf32>
    %50 = arith.addf %46, %49 : vector<8x256xf32>
    %cst_19 = arith.constant 1.000000e+00 : f32
    %51 = vector.broadcast %cst_19 : f32 to vector<8x256xf32>
    %52 = arith.subf %50, %51 : vector<8x256xf32>
    %cst_20 = arith.constant 0.000000e+00 : f32
    %53 = vector.broadcast %cst_20 : f32 to vector<8x256xf32>
    %54 = arith.cmpf ogt, %52, %53 : vector<8x256xf32>
    %55 = arith.extui %54 : vector<8x256xi1> to vector<8x256xi32>
    %56 = arith.sitofp %55 : vector<8x256xi32> to vector<8x256xf32>
    %c2_21 = arith.constant 2 : index
    %57 = arith.index_cast %1 : i32 to index
    %c0_22 = arith.constant 0 : index
    %58 = vector.load %arg2[%c2_21, %57, %c0_22] : memref<4x8x256xf32, #tpu.memory_space<vmem>>, vector<1x8x256xf32>
    %59 = vector.shape_cast %58 : vector<1x8x256xf32> to vector<8x256xf32>
    %60 = vector.shape_cast %56 : vector<8x256xf32> to vector<1x8x256xf32>
    tpu.vector_store %arg2[%c2_21, %57, %c0_22], %60 {strides = array<i32>} : memref<4x8x256xf32, #tpu.memory_space<vmem>>, vector<1x8x256xf32>,
    %cst_23 = arith.constant 0.000000e+00 : f32
    %61 = vector.broadcast %cst_23 : f32 to vector<8x256xf32>
    %62 = arith.select %54, %61, %50 : vector<8x256xi1>, vector<8x256xf32>
    %c2_24 = arith.constant 2 : index
    %63 = arith.index_cast %1 : i32 to index
    %c0_25 = arith.constant 0 : index
    %64 = vector.load %arg3[%c2_24, %63, %c0_25] : memref<4x8x256xf32, #tpu.memory_space<vmem>>, vector<1x8x256xf32>
    %65 = vector.shape_cast %64 : vector<1x8x256xf32> to vector<8x256xf32>
    %66 = vector.shape_cast %62 : vector<8x256xf32> to vector<1x8x256xf32>
    tpu.vector_store %arg3[%c2_24, %63, %c0_25], %66 {strides = array<i32>} : memref<4x8x256xf32, #tpu.memory_space<vmem>>, vector<1x8x256xf32>,
    %cst_26 = arith.constant 5.000000e-01 : f32
    %67 = vector.broadcast %cst_26 : f32 to vector<8x256xf32>
    %68 = arith.mulf %62, %67 : vector<8x256xf32>
    %c3 = arith.constant 3 : index
    %69 = arith.index_cast %1 : i32 to index
    %c0_27 = arith.constant 0 : index
    %70 = vector.load %arg1[%c3, %69, %c0_27] : memref<4x8x256xf32, #tpu.memory_space<vmem>>, vector<1x8x256xf32>
    %71 = vector.shape_cast %70 : vector<1x8x256xf32> to vector<8x256xf32>
    %72 = arith.addf %68, %71 : vector<8x256xf32>
    %cst_28 = arith.constant 1.000000e+00 : f32
    %73 = vector.broadcast %cst_28 : f32 to vector<8x256xf32>
    %74 = arith.subf %72, %73 : vector<8x256xf32>
    %cst_29 = arith.constant 0.000000e+00 : f32
    %75 = vector.broadcast %cst_29 : f32 to vector<8x256xf32>
    %76 = arith.cmpf ogt, %74, %75 : vector<8x256xf32>
    %77 = arith.extui %76 : vector<8x256xi1> to vector<8x256xi32>
    %78 = arith.sitofp %77 : vector<8x256xi32> to vector<8x256xf32>
    %c3_30 = arith.constant 3 : index
    %79 = arith.index_cast %1 : i32 to index
    %c0_31 = arith.constant 0 : index
    %80 = vector.load %arg2[%c3_30, %79, %c0_31] : memref<4x8x256xf32, #tpu.memory_space<vmem>>, vector<1x8x256xf32>
    %81 = vector.shape_cast %80 : vector<1x8x256xf32> to vector<8x256xf32>
    %82 = vector.shape_cast %78 : vector<8x256xf32> to vector<1x8x256xf32>
    tpu.vector_store %arg2[%c3_30, %79, %c0_31], %82 {strides = array<i32>} : memref<4x8x256xf32, #tpu.memory_space<vmem>>, vector<1x8x256xf32>,
    %cst_32 = arith.constant 0.000000e+00 : f32
    %83 = vector.broadcast %cst_32 : f32 to vector<8x256xf32>
    %84 = arith.select %76, %83, %72 : vector<8x256xi1>, vector<8x256xf32>
    %c3_33 = arith.constant 3 : index
    %85 = arith.index_cast %1 : i32 to index
    %c0_34 = arith.constant 0 : index
    %86 = vector.load %arg3[%c3_33, %85, %c0_34] : memref<4x8x256xf32, #tpu.memory_space<vmem>>, vector<1x8x256xf32>
    %87 = vector.shape_cast %86 : vector<1x8x256xf32> to vector<8x256xf32>
    %88 = vector.shape_cast %84 : vector<8x256xf32> to vector<1x8x256xf32>
    tpu.vector_store %arg3[%c3_33, %85, %c0_34], %88 {strides = array<i32>} : memref<4x8x256xf32, #tpu.memory_space<vmem>>, vector<1x8x256xf32>,
    %c1_i32 = arith.constant 1 : i32
    return
  }
  func.func @transform_0(%arg0: i32) -> (i32, i32, i32) {
    %c0_i32 = arith.constant 0 : i32
    %c0_i32_0 = arith.constant 0 : i32
    %c0_i32_1 = arith.constant 0 : i32
    return %c0_i32, %arg0, %c0_i32_0 : i32, i32, i32
  }
  func.func @transform_1(%arg0: i32) -> (i32, i32, i32) {
    %c0_i32 = arith.constant 0 : i32
    %c0_i32_0 = arith.constant 0 : i32
    %c0_i32_1 = arith.constant 0 : i32
    return %c0_i32, %arg0, %c0_i32_0 : i32, i32, i32
  }
  func.func @transform_2(%arg0: i32) -> (i32, i32, i32) {
    %c0_i32 = arith.constant 0 : i32
    %c0_i32_0 = arith.constant 0 : i32
    %c0_i32_1 = arith.constant 0 : i32
    return %c0_i32, %arg0, %c0_i32_0 : i32, i32, i32
  }
}

</mosaic_0001>

<bundles_post_ra>
// kernel: tpu_custom_call.1
= control target key start
LH: loop header
LB: loop body
LE: loop exit
PB: predicated region body
PF: predicated region fallthrough
CT: control target
= control target key end

     0   :  { %8 = vsyncpa [#allocation3], 0  ;;  %s341_s0 = inlined_call_operand.hbm [shape: f32[4,8,256], index: 0, kind: input, shape index: {}]   ;;  %s342_s1 = inlined_call_operand.hbm [shape: f32[4,8,256], index: 1, kind: output, shape index: {0}]   ;;  %s343_s2 = inlined_call_operand.hbm [shape: f32[4,8,256], index: 2, kind: output, shape index: {1}]  }
   0x1   :  { %9 = vsyncpa [#allocation4], 0 }
   0x2   :  { %10 = vsyncpa [#allocation7], 0  ;;  %s268_s9 = smov [#allocation2]   ;;  %s196_s13 = scalar_lea.hbm %s341_s0, 1024 }
   0x3   :  { %s16_s10 = sshll.u32 %s268_s9, 4  ;;  %p197_p0 = scmp.ne.s32.totalorder %s341_s0, %s196_s13  ;;  %s17_s10 = int_to_ptr.vmem [resolvable:$true] %s16_s10 }
   0x4   :  { %p200_p1 = scmp.lt.u32.totalorder %s196_s13, %s341_s0 }
   0x6   :  { %p202_p2 = pnand %p200_p1, %p197_p0 }
   0x8   :  { %205 = shalt.err (!%p202_p2)
}
   0x9   :  { %s206_s18 = scalar_lea.vmem %s17_s10, 1024  ;;  %p211_p4 = scmp.lt.s32.totalorder %s17_s10, %s17_s10 }
   0xa   :  { %p207_p3 = scmp.ne.s32.totalorder %s17_s10, %s206_s18  ;;  %p212_p5 = scmp.lt.s32.totalorder %s206_s18, %s206_s18 }
   0xc   :  { %p213_p6 = por %p212_p5, %p211_p4 }
   0xe   :  { %p214_p7 = pnand %p213_p6, %p207_p3 }
  0x10   :  { %217 = shalt.err (!%p214_p7)
}
  0x11   :  { %s269_s19 = smov 256   ;;  %s270_s20 = smov 16  }
  0x12   :  { %22 = dma.hbm_to_vmem [thread:$0]  %s341_s0, 1024, %s17_s10, [#allocation3], %s269_s19, %s269_s19, %s270_s20  }
  0x13   :  { %262 = dma.done.wait [#allocation3], 1024  }
  0x14   :  { %263 = vsyncadd [#allocation3], 4294966272  ;;  %v29_v0 = vld [vmem:[#allocation2] sm:$0xff]  ;;  %v30_v1 = vld [vmem:[#allocation2 + $0x8] sm:$0xff]  ;;  %v271_v4 = vmov 0.0   ;;  %s272_s0 = smov [#allocation5]  }
  0x15   :  { %v174_v2 = vadd.f32 -1.0, %v29_v0  ;;  %v175_v3 = vadd.f32 -1.0, %v30_v1  ;;  %v56_v8 = vld [vmem:[#allocation2 + $0x10] sm:$0xff]  ;;  %v57_v10 = vld [vmem:[#allocation2 + $0x18] sm:$0xff]  ;;  %v83_v20 = vld [vmem:[#allocation2 + $0x20] sm:$0xff]  ;;  %s137_s23 = sshll.u32 %s272_s0, 4  ;;  %s138_s23 = int_to_ptr.vmem [resolvable:$true] %s137_s23 }
  0x16   :  { %v84_v22 = vld [vmem:[#allocation2 + $0x28] sm:$0xff]  ;;  %v110_v32 = vld [vmem:[#allocation2 + $0x30] sm:$0xff]  ;;  %v111_v34 = vld [vmem:[#allocation2 + $0x38] sm:$0xff]  ;;  %s273_s24 = smov [#allocation6]   ;;  %s218_s26 = scalar_lea.vmem %s138_s23, 1024 }
  0x17   :  { %vm35_vm0 = vcmp.gt.f32.partialorder %v174_v2, 0.0  ;;  %vm36_vm1 = vcmp.gt.f32.partialorder %v175_v3, 0.0  ;;  %s149_s25 = sshll.u32 %s273_s24, 4  ;;  %p219_p8 = scmp.ne.s32.totalorder %s138_s23, %s218_s26  ;;  %s304_s25 = int_to_ptr.vmem [resolvable:$true] %s149_s25 }
  0x18   :  { %v176_v5 = vsel %vm35_vm0, 1.0, %v271_v4  ;;  %v177_v6 = vsel %vm36_vm1, 1.0, %v271_v4  ;;  %v45_v7 = vsel %vm35_vm0, 0.0, %v29_v0  ;;  %v46_v9 = vsel %vm36_vm1, 0.0, %v30_v1  ;;  %p223_p9 = scmp.lt.s32.totalorder %s138_s23, %s138_s23  ;;  %p224_p10 = scmp.lt.s32.totalorder %s218_s26, %s218_s26 }
  0x19   :  { %43 = vst [vmem:[#allocation5] sm:$0xff] %v176_v5  ;;  %44 = vst [vmem:[#allocation5 + $0x8] sm:$0xff] %v177_v6  ;;  %v51_v11 = vmul.f32 0.5, %v45_v7  ;;  %v52_v12 = vmul.f32 0.5, %v46_v9 }
  0x1a   :  { %49 = vst [vmem:[#allocation6] sm:$0xff] %v45_v7  ;;  %50 = vst [vmem:[#allocation6 + $0x8] sm:$0xff] %v46_v9  ;;  %p225_p11 = por %p224_p10, %p223_p9 }
  0x1b   :  { %v58_v13 = vadd.f32 %v56_v8, %v51_v11  ;;  %v59_v14 = vadd.f32 %v57_v10, %v52_v12 }
  0x1c   :  { %p226_p12 = pnand %p225_p11, %p219_p8 }
  0x1d   :  { %v178_v15 = vadd.f32 -1.0, %v58_v13  ;;  %v179_v16 = vadd.f32 -1.0, %v59_v14 }
  0x1f   :  { %vm62_vm2 = vcmp.gt.f32.partialorder %v178_v15, 0.0  ;;  %vm63_vm3 = vcmp.gt.f32.partialorder %v179_v16, 0.0 }
  0x20   :  { %v180_v17 = vsel %vm62_vm2, 1.0, %v271_v4  ;;  %v181_v18 = vsel %vm63_vm3, 1.0, %v271_v4  ;;  %v72_v19 = vsel %vm62_vm2, 0.0, %v58_v13  ;;  %v73_v21 = vsel %vm63_vm3, 0.0, %v59_v14 }
  0x21   :  { %70 = vst [vmem:[#allocation5 + $0x10] sm:$0xff] %v180_v17  ;;  %71 = vst [vmem:[#allocation5 + $0x18] sm:$0xff] %v181_v18  ;;  %v78_v23 = vmul.f32 0.5, %v72_v19  ;;  %v79_v24 = vmul.f32 0.5, %v73_v21 }
  0x22   :  { %76 = vst [vmem:[#allocation6 + $0x10] sm:$0xff] %v72_v19  ;;  %77 = vst [vmem:[#allocation6 + $0x18] sm:$0xff] %v73_v21 }
  0x23   :  { %v85_v25 = vadd.f32 %v83_v20, %v78_v23  ;;  %v86_v26 = vadd.f32 %v84_v22, %v79_v24 }
  0x25   :  { %v182_v27 = vadd.f32 -1.0, %v85_v25  ;;  %v183_v28 = vadd.f32 -1.0, %v86_v26 }
  0x27   :  { %vm89_vm4 = vcmp.gt.f32.partialorder %v182_v27, 0.0  ;;  %vm90_vm5 = vcmp.gt.f32.partialorder %v183_v28, 0.0 }
  0x28   :  { %v184_v29 = vsel %vm89_vm4, 1.0, %v271_v4  ;;  %v185_v30 = vsel %vm90_vm5, 1.0, %v271_v4  ;;  %v99_v31 = vsel %vm89_vm4, 0.0, %v85_v25  ;;  %v100_v33 = vsel %vm90_vm5, 0.0, %v86_v26 }
  0x29   :  { %97 = vst [vmem:[#allocation5 + $0x20] sm:$0xff] %v184_v29  ;;  %98 = vst [vmem:[#allocation5 + $0x28] sm:$0xff] %v185_v30  ;;  %v105_v35 = vmul.f32 0.5, %v99_v31  ;;  %v106_v36 = vmul.f32 0.5, %v100_v33 }
  0x2a   :  { %103 = vst [vmem:[#allocation6 + $0x20] sm:$0xff] %v99_v31  ;;  %104 = vst [vmem:[#allocation6 + $0x28] sm:$0xff] %v100_v33 }
  0x2b   :  { %v112_v37 = vadd.f32 %v110_v32, %v105_v35  ;;  %v113_v38 = vadd.f32 %v111_v34, %v106_v36 }
  0x2d   :  { %v186_v39 = vadd.f32 -1.0, %v112_v37  ;;  %v187_v40 = vadd.f32 -1.0, %v113_v38 }
  0x2f   :  { %vm116_vm6 = vcmp.gt.f32.partialorder %v186_v39, 0.0  ;;  %vm117_vm7 = vcmp.gt.f32.partialorder %v187_v40, 0.0 }
  0x30   :  { %v188_v41 = vsel %vm116_vm6, 1.0, %v271_v4  ;;  %v189_v42 = vsel %vm117_vm7, 1.0, %v271_v4  ;;  %v126_v43 = vsel %vm116_vm6, 0.0, %v112_v37  ;;  %v127_v44 = vsel %vm117_vm7, 0.0, %v113_v38 }
  0x31   :  { %124 = vst [vmem:[#allocation5 + $0x30] sm:$0xff] %v188_v41  ;;  %125 = vst [vmem:[#allocation5 + $0x38] sm:$0xff] %v189_v42 }
  0x32   :  { %130 = vst [vmem:[#allocation6 + $0x30] sm:$0xff] %v126_v43  ;;  %131 = vst [vmem:[#allocation6 + $0x38] sm:$0xff] %v127_v44 }
  0x33   :  { %229 = shalt.err (!%p226_p12)
}
  0x34   :  { %s230_s29 = scalar_lea.hbm %s342_s1, 1024 }
  0x35   :  { %p231_p13 = scmp.ne.s32.totalorder %s342_s1, %s230_s29  ;;  %p234_p0 = scmp.lt.u32.totalorder %s230_s29, %s342_s1 }
  0x37   :  { %p236_p1 = pnand %p234_p0, %p231_p13 }
  0x39   :  { %239 = shalt.err (!%p236_p1)
}
  0x3a   :  { %143 = dma.vmem_to_hbm [thread:$0]  %s138_s23, 1024, %s342_s1, [#allocation4], %s269_s19, %s269_s19, %s270_s20  }
  0x3b   :  { %s240_s8 = scalar_lea.vmem %s304_s25, 1024  ;;  %p245_p3 = scmp.lt.s32.totalorder %s304_s25, %s304_s25 }
  0x3c   :  { %p241_p2 = scmp.ne.s32.totalorder %s304_s25, %s240_s8  ;;  %p246_p4 = scmp.lt.s32.totalorder %s240_s8, %s240_s8 }
  0x3e   :  { %p247_p5 = por %p246_p4, %p245_p3 }
  0x40   :  { %p248_p6 = pnand %p247_p5, %p241_p2 }
  0x42   :  { %251 = shalt.err (!%p248_p6)
}
  0x43   :  { %s252_s11 = scalar_lea.hbm %s343_s2, 1024 }
  0x44   :  { %p253_p7 = scmp.ne.s32.totalorder %s343_s2, %s252_s11  ;;  %p256_p8 = scmp.lt.u32.totalorder %s252_s11, %s343_s2 }
  0x46   :  { %p258_p9 = pnand %p256_p8, %p253_p7 }
  0x48   :  { %261 = shalt.err (!%p258_p9)
}
  0x49   :  { %155 = dma.vmem_to_hbm [thread:$0]  %s304_s25, 1024, %s343_s2, [#allocation7], %s269_s19, %s269_s19, %s270_s20  }
  0x4a   :  { %264 = dma.done.wait [#allocation4], 1024  }
  0x4b   :  { %265 = vsyncadd [#allocation4], 4294966272 }
  0x4c   :  { %266 = dma.done.wait [#allocation7], 1024  }
  0x4d   :  { %267 = vsyncadd [#allocation7], 4294966272 }
  0x4e   :  { %162 = vsyncpa [#allocation3], 1 }
  0x4f   :  { %163 = vsyncpa [#allocation4], 1 }
  0x50   :  { %164 = vsyncpa [#allocation7], 1 }

</bundles_post_ra>
